<compile_context>
chip_gen: v7x
topology: tpu7x:2x2x1
jax: 0.10.0
libtpu: 0.0.40
codegen_flags: <defaults>
</compile_context>

<pallas_src>
import math
import jax
import jax.numpy as jnp
from jax.experimental import pallas as pl
from jax.experimental.pallas import tpu as pltpu


# ---------------------------------------------------------------------------
# Kernels
# ---------------------------------------------------------------------------

def _matmul_bias_kernel(x_ref, w_ref, b_ref, o_ref, acc_ref):
    # x_ref: (tm, tk)  w_ref: (tk, tn)  b_ref: (1, tn)  o_ref: (tm, tn)
    # acc_ref: (tm, tn) f32 scratch accumulator
    k = pl.program_id(2)
    prod = jnp.dot(x_ref[...], w_ref[...], preferred_element_type=jnp.float32)

    @pl.when(k == 0)
    def _():  # initialize with the first product (no zero-fill round-trip)
        acc_ref[...] = prod

    @pl.when(k != 0)
    def _():
        acc_ref[...] += prod

    @pl.when(k == pl.num_programs(2) - 1)
    def _():  # bias added exactly once, in f32, in the epilogue
        o_ref[...] = (acc_ref[...] + b_ref[...].astype(jnp.float32)).astype(o_ref.dtype)


def _matmul_kernel(x_ref, w_ref, o_ref, acc_ref):
    k = pl.program_id(2)
    prod = jnp.dot(x_ref[...], w_ref[...], preferred_element_type=jnp.float32)

    @pl.when(k == 0)
    def _():
        acc_ref[...] = prod

    @pl.when(k != 0)
    def _():
        acc_ref[...] += prod

    @pl.when(k == pl.num_programs(2) - 1)
    def _():
        o_ref[...] = acc_ref[...].astype(o_ref.dtype)


# ---------------------------------------------------------------------------
# Helpers
# ---------------------------------------------------------------------------

def _round_up(x, m):
    return (x + m - 1) // m * m


def _sublane_granule(dtype):
    """Rows per packed vreg sublane group for this dtype."""
    itemsize = jnp.dtype(dtype).itemsize
    if itemsize >= 4:
        return 8
    if itemsize == 2:
        return 16
    return 32


def _tpu_vmem_bytes():
    try:
        info = pltpu.get_tpu_info()
        for attr in ("vmem_capacity_bytes", "vmem_size_bytes", "vmem_bytes"):
            v = getattr(info, attr, None)
            if v:
                return int(v)
    except Exception:
        pass
    return 128 * 1024 * 1024  # conservative default (v5e/v6e)


def _default_tiles():
    """Per-generation tile defaults and VMEM budget."""
    vmem = _tpu_vmem_bytes()
    if vmem >= 100 * (1 << 20):
        # v5e / v6e: 128 MiB VMEM -> go big, raise the scoped limit.
        return 512, 1024, 1024, 96 * (1 << 20)
    # v7x: 64 MiB VMEM per TensorCore -> keep double-buffered footprint well
    # under ~40 MiB so software pipelining survives.
    return 512, 512, 1024, 40 * (1 << 20)


# ---------------------------------------------------------------------------
# Public wrapper
# ---------------------------------------------------------------------------

def linear_pallas(x, weight, bias=None, *, transposed_weight=False,
                  tm=None, tn=None, tk=None):
    """y = x @ weight.T + bias  (PyTorch nn.Linear semantics).

    x:      (..., d_in)
    weight: (d_out, d_in)  PyTorch layout, or (d_in, d_out) if
            transposed_weight=True (pre-transpose & cache at init to keep the
            transpose out of the per-call hot path).
    bias:   (d_out,) or None
    Output dtype follows x.dtype (bf16 in -> bf16 out, f32 accumulation inside).
    """
    if transposed_weight:
        d_in, d_out = weight.shape
        w_t = weight                       # already (K, N)
    else:
        d_out, d_in = weight.shape
        w_t = jnp.transpose(weight)        # one-time (K, N); cache at init ideally

    orig_lead = x.shape[:-1]
    m = int(math.prod(orig_lead)) if orig_lead else 1
    x2d = x.reshape(m, d_in)

    tm_d, tn_d, tk_d, vmem_limit = _default_tiles()
    tm = tm_d if tm is None else tm
    tn = tn_d if tn is None else tn
    tk = tk_d if tk is None else tk

    g = _sublane_granule(x.dtype)

    # K / N tiles: multiples of 128, clamped to the (padded) problem size.
    tk = min(tk, _round_up(d_in, 128))
    tn = min(tn, _round_up(d_out, 128))
    k_pad = _round_up(d_in, tk)
    n_pad = _round_up(d_out, tn)

    # M tile: dtype-dependent sublane granule; minimal padding when M is small.
    if m <= tm:
        tm = _round_up(m, g)
        m_pad = tm
    else:
        tm = _round_up(tm, g)
        m_pad = _round_up(m, tm)

    # Megacore (v7x, 2 TCs): guarantee >=2 parallel M x N output tiles for
    # non-trivial problems. Halving keeps divisibility since m_pad % tm == 0
    # and n_pad % tn == 0 before each halving.
    if m_pad * n_pad >= 2 * 256 * 256:
        while (m_pad // tm) * (n_pad // tn) < 2:
            if tn % 256 == 0:
                tn //= 2
            elif tm % 16 == 0:
                tm //= 2
            else:
                break

    grid = (m_pad // tm, n_pad // tn, k_pad // tk)

    # Zero-pad to tile multiples (no-op for aligned transformer shapes).
    if (m_pad, k_pad) != (m, d_in):
        x2d = jnp.pad(x2d, ((0, m_pad - m), (0, k_pad - d_in)))
    if (k_pad, n_pad) != (d_in, d_out):
        # TODO(synk): for production, cache the padded+transposed weight at
        # parameter-init time so this copy is not in the per-call hot path.
        w_t = jnp.pad(w_t, ((0, k_pad - d_in), (0, n_pad - d_out)))

    x_spec = pl.BlockSpec((tm, tk), lambda i, j, k: (i, k))
    w_spec = pl.BlockSpec((tk, tn), lambda i, j, k: (k, j))
    o_spec = pl.BlockSpec((tm, tn), lambda i, j, k: (i, j))

    itemsize = jnp.dtype(x.dtype).itemsize
    cost = pl.CostEstimate(
        flops=2 * m * d_out * d_in,
        transcendentals=0,
        # Real tiled traffic: X re-read per N tile, W re-read per M tile.
        bytes_accessed=(m_pad * k_pad * (n_pad // tn)
                        + k_pad * n_pad * (m_pad // tm)
                        + m_pad * n_pad) * itemsize,
    )
    cparams = pltpu.CompilerParams(
        dimension_semantics=("parallel", "parallel", "arbitrary"),
        vmem_limit_bytes=vmem_limit,
    )
    scratch = [pltpu.VMEM((tm, tn), jnp.float32)]
    out_shape = jax.ShapeDtypeStruct((m_pad, n_pad), x.dtype)

    if bias is not None:
        b2d = bias.reshape(1, d_out)
        if n_pad != d_out:
            b2d = jnp.pad(b2d, ((0, 0), (0, n_pad - d_out)))
        b_spec = pl.BlockSpec((1, tn), lambda i, j, k: (0, j))
        out = pl.pallas_call(
            _matmul_bias_kernel,
            out_shape=out_shape,
            grid_spec=pltpu.PrefetchScalarGridSpec(
                num_scalar_prefetch=0,
                grid=grid,
                in_specs=[x_spec, w_spec, b_spec],
                out_specs=o_spec,
                scratch_shapes=scratch,
            ),
            compiler_params=cparams,
            cost_estimate=cost,
        )(x2d, w_t, b2d)
    else:
        out = pl.pallas_call(
            _matmul_kernel,
            out_shape=out_shape,
            grid_spec=pltpu.PrefetchScalarGridSpec(
                num_scalar_prefetch=0,
                grid=grid,
                in_specs=[x_spec, w_spec],
                out_specs=o_spec,
                scratch_shapes=scratch,
            ),
            compiler_params=cparams,
            cost_estimate=cost,
        )(x2d, w_t)

    if (m_pad, n_pad) != (m, d_out):
        out = out[:m, :d_out]
    return out.reshape(*orig_lead, d_out)


def init_linear_params(key, d_in, d_out, bias=True, dtype=jnp.float32):
    """Deterministic params matching the PyTorch module's __init__:
       weight (d_out, d_in) ~ xavier_normal; bias ~ U(-1/sqrt(d_in), 1/sqrt(d_in))."""
    kw, kb = jax.random.split(key)
    std = math.sqrt(2.0 / (d_in + d_out))  # xavier_normal, gain=1
    weight = std * jax.random.normal(kw, (d_out, d_in), dtype=dtype)
    if bias:
        bound = 1.0 / math.sqrt(d_in)
        b = jax.random.uniform(kb, (d_out,), dtype=dtype, minval=-bound, maxval=bound)
    else:
        b = None
    return weight, b


if __name__ == "__main__":
    key = jax.random.PRNGKey(0)
    k_x, k_p = jax.random.split(key)

    batch, seq, d_in, d_out = 2, 8, 32, 64
    x = jax.random.normal(k_x, (batch, seq, d_in), dtype=jnp.float32)
    weight, bias = init_linear_params(k_p, d_in, d_out, bias=True)

    y_ref = x @ weight.T + bias

    # Default path (wrapper transposes weight once)
    y = jax.block_until_ready(linear_pallas(x, weight, bias))
    assert y.shape == (batch, seq, d_out)
    assert jnp.allclose(y, y_ref, atol=1e-5, rtol=1e-5)

    # Pre-transposed (cached) weight path — no per-call transpose in the wrapper
    weight_t = jnp.transpose(weight)
    y_t = jax.block_until_ready(
        linear_pallas(x, weight_t, bias, transposed_weight=True))
    assert jnp.allclose(y_t, y_ref, atol=1e-5, rtol=1e-5)

    # No-bias path (separate kernel, no zero-bias DMA)
    y_nb = jax.block_until_ready(linear_pallas(x, weight, None))
    assert jnp.allclose(y_nb, x @ weight.T, atol=1e-5, rtol=1e-5)

    print("KERNEL_OK")
</pallas_src>

<mosaic_0001>
module attributes {stable_mosaic.version = 11 : i64} {
  func.func @_matmul_bias_kernel(%arg0: i32, %arg1: i32, %arg2: i32, %arg3: memref<16x128xf32, #tpu.memory_space<vmem>>, %arg4: memref<128x128xf32, #tpu.memory_space<vmem>>, %arg5: memref<1x128xf32, #tpu.memory_space<vmem>>, %arg6: memref<16x128xf32, #tpu.memory_space<vmem>>, %arg7: memref<16x128xf32, #tpu.memory_space<vmem>>) attributes {dimension_semantics = [#tpu.dimension_semantics<parallel>, #tpu.dimension_semantics<parallel>, #tpu.dimension_semantics<arbitrary>], iteration_bounds = array<i64: 1, 1, 1>, scalar_prefetch = 0 : i64, scratch_operands = 1 : i64, tpu.core_type = #tpu.core_type<tc>, window_params = [{transform_indices = @transform_0, window_bounds = array<i64: 16, 128>}, {transform_indices = @transform_1, window_bounds = array<i64: 128, 128>}, {transform_indices = @transform_2, window_bounds = array<i64: 1, 128>}, {transform_indices = @transform_3, window_bounds = array<i64: 16, 128>}]} {
    %c0 = arith.constant 0 : index
    %c0_0 = arith.constant 0 : index
    %0 = vector.load %arg3[%c0, %c0_0] : memref<16x128xf32, #tpu.memory_space<vmem>>, vector<16x128xf32>
    %c0_1 = arith.constant 0 : index
    %c0_2 = arith.constant 0 : index
    %1 = vector.load %arg4[%c0_1, %c0_2] : memref<128x128xf32, #tpu.memory_space<vmem>>, vector<128x128xf32>
    %cst = arith.constant dense<0.000000e+00> : vector<16x128xf32>
    %2 = tpu.matmul %0, %1, %cst {dimension_numbers = #tpu.dot_dimension_numbers<[1], [0], [0], [1], [0, 0, 1, 1], [], []>} : vector<16x128xf32>, vector<128x128xf32>, vector<16x128xf32> -> vector<16x128xf32>
    %c0_i32 = arith.constant 0 : i32
    %3 = arith.cmpi eq, %arg2, %c0_i32 : i32
    %4 = arith.extui %3 : i1 to i32
    %c0_i32_3 = arith.constant 0 : i32
    %5 = arith.cmpi ne, %4, %c0_i32_3 : i32
    scf.if %5 {
      %c0_8 = arith.constant 0 : index
      %c0_9 = arith.constant 0 : index
      %12 = vector.load %arg7[%c0_8, %c0_9] : memref<16x128xf32, #tpu.memory_space<vmem>>, vector<16x128xf32>
      tpu.vector_store %arg7[%c0_8, %c0_9], %2 {strides = array<i32>} : memref<16x128xf32, #tpu.memory_space<vmem>>, vector<16x128xf32>,
    } else {
    }
    %c0_i32_4 = arith.constant 0 : i32
    %6 = arith.cmpi ne, %arg2, %c0_i32_4 : i32
    %7 = arith.extui %6 : i1 to i32
    %c0_i32_5 = arith.constant 0 : i32
    %8 = arith.cmpi ne, %7, %c0_i32_5 : i32
    scf.if %8 {
      %c0_8 = arith.constant 0 : index
      %c0_9 = arith.constant 0 : index
      %12 = vector.load %arg7[%c0_8, %c0_9] : memref<16x128xf32, #tpu.memory_space<vmem>>, vector<16x128xf32>
      %13 = arith.addf %12, %2 : vector<16x128xf32>
      %c0_10 = arith.constant 0 : index
      %c0_11 = arith.constant 0 : index
      %14 = vector.load %arg7[%c0_10, %c0_11] : memref<16x128xf32, #tpu.memory_space<vmem>>, vector<16x128xf32>
      tpu.vector_store %arg7[%c0_10, %c0_11], %13 {strides = array<i32>} : memref<16x128xf32, #tpu.memory_space<vmem>>, vector<16x128xf32>,
    } else {
    }
    %c0_i32_6 = arith.constant 0 : i32
    %9 = arith.cmpi eq, %arg2, %c0_i32_6 : i32
    %10 = arith.extui %9 : i1 to i32
    %c0_i32_7 = arith.constant 0 : i32
    %11 = arith.cmpi ne, %10, %c0_i32_7 : i32
    scf.if %11 {
      %c0_8 = arith.constant 0 : index
      %c0_9 = arith.constant 0 : index
      %12 = vector.load %arg7[%c0_8, %c0_9] : memref<16x128xf32, #tpu.memory_space<vmem>>, vector<16x128xf32>
      %c0_10 = arith.constant 0 : index
      %c0_11 = arith.constant 0 : index
      %13 = vector.load %arg5[%c0_10, %c0_11] : memref<1x128xf32, #tpu.memory_space<vmem>>, vector<1x128xf32>
      %14 = vector.broadcast %13 : vector<1x128xf32> to vector<16x128xf32>
      %15 = arith.addf %12, %14 : vector<16x128xf32>
      %c0_12 = arith.constant 0 : index
      %c0_13 = arith.constant 0 : index
      %16 = vector.load %arg6[%c0_12, %c0_13] : memref<16x128xf32, #tpu.memory_space<vmem>>, vector<16x128xf32>
      tpu.vector_store %arg6[%c0_12, %c0_13], %15 {strides = array<i32>} : memref<16x128xf32, #tpu.memory_space<vmem>>, vector<16x128xf32>,
    } else {
    }
    return
  }
  func.func @transform_0(%arg0: i32, %arg1: i32, %arg2: i32) -> (i32, i32) {
    %c0_i32 = arith.constant 0 : i32
    return %arg0, %arg2 : i32, i32
  }
  func.func @transform_1(%arg0: i32, %arg1: i32, %arg2: i32) -> (i32, i32) {
    %c0_i32 = arith.constant 0 : i32
    return %arg2, %arg1 : i32, i32
  }
  func.func @transform_2(%arg0: i32, %arg1: i32, %arg2: i32) -> (i32, i32) {
    %c0_i32 = arith.constant 0 : i32
    %c0_i32_0 = arith.constant 0 : i32
    return %c0_i32, %arg1 : i32, i32
  }
  func.func @transform_3(%arg0: i32, %arg1: i32, %arg2: i32) -> (i32, i32) {
    %c0_i32 = arith.constant 0 : i32
    return %arg0, %arg1 : i32, i32
  }
}

</mosaic_0001>

<bundles_post_ra>
// kernel: tpu_custom_call.1
= control target key start
LH: loop header
LB: loop body
LE: loop exit
PB: predicated region body
PF: predicated region fallthrough
CT: control target
= control target key end

     0   :  { %8 = vsyncpa [#allocation4], 0  ;;  %s473_s0 = inlined_call_operand.hbm [shape: f32[16,128], index: 0, kind: input, shape index: {}]   ;;  %s474_s1 = inlined_call_operand.hbm [shape: f32[128,128], index: 1, kind: input, shape index: {}]   ;;  %s475_s2 = inlined_call_operand.hbm [shape: f32[1,128], index: 2, kind: input, shape index: {}]   ;;  %s476_s3 = inlined_call_operand.hbm [shape: f32[16,128], index: 3, kind: output, shape index: {}]  }
   0x1   :  { %9 = vsyncpa [#allocation7], 0 }
   0x2   :  { %10 = vsyncpa [#allocation5], 0  ;;  %s383_s12 = smov [#allocation6]   ;;  %s384_s14 = smov [#allocation3]  }
   0x3   :  { %s28_s13 = sshll.u32 %s383_s12, 4  ;;  %s16_s15 = sshll.u32 %s384_s14, 4  ;;  %s29_s13 = int_to_ptr.vmem [resolvable:$true] %s28_s13  ;;  %s409_s15 = int_to_ptr.vmem [resolvable:$true] %s16_s15 }
   0x4   :  { %s289_s18 = scalar_lea.hbm %s474_s1, 2048 }
   0x5   :  { %p290_p0 = scmp.ne.s32.totalorder %s474_s1, %s289_s18  ;;  %p293_p1 = scmp.lt.u32.totalorder %s289_s18, %s474_s1 }
   0x7   :  { %p295_p2 = pnand %p293_p1, %p290_p0 }
   0x9   :  { %298 = shalt.err (!%p295_p2)
}
   0xa   :  { %s299_s23 = scalar_lea.vmem %s29_s13, 2048  ;;  %p304_p4 = scmp.lt.s32.totalorder %s29_s13, %s29_s13 }
   0xb   :  { %p300_p3 = scmp.ne.s32.totalorder %s29_s13, %s299_s23  ;;  %p305_p5 = scmp.lt.s32.totalorder %s299_s23, %s299_s23 }
   0xd   :  { %p306_p6 = por %p305_p5, %p304_p4 }
   0xf   :  { %p307_p7 = pnand %p306_p6, %p300_p3 }
  0x11   :  { %310 = shalt.err (!%p307_p7)
}
  0x12   :  { %s385_s24 = smov 128   ;;  %s386_s25 = smov 8  }
  0x13   :  { %34 = dma.hbm_to_vmem [thread:$0]  %s474_s1, 2048, %s29_s13, [#allocation7], %s385_s24, %s385_s24, %s386_s25  }
  0x14   :  { %s311_s30 = scalar_lea.hbm %s473_s0, 256 }
  0x15   :  { %p312_p8 = scmp.ne.s32.totalorder %s473_s0, %s311_s30  ;;  %p315_p9 = scmp.lt.u32.totalorder %s311_s30, %s473_s0 }
  0x17   :  { %p317_p10 = pnand %p315_p9, %p312_p8 }
  0x19   :  { %320 = shalt.err (!%p317_p10)
}
  0x1a   :  { %s321_s8 = scalar_lea.vmem %s409_s15, 256  ;;  %p326_p12 = scmp.lt.s32.totalorder %s409_s15, %s409_s15 }
  0x1b   :  { %p322_p11 = scmp.ne.s32.totalorder %s409_s15, %s321_s8  ;;  %p327_p13 = scmp.lt.s32.totalorder %s321_s8, %s321_s8 }
  0x1d   :  { %p328_p0 = por %p327_p13, %p326_p12 }
  0x1f   :  { %p329_p1 = pnand %p328_p0, %p322_p11 }
  0x21   :  { %332 = shalt.err (!%p329_p1)
}
  0x22   :  { %22 = dma.hbm_to_vmem [thread:$0]  %s473_s0, 256, %s409_s15, [#allocation4], %s385_s24, %s385_s24, %s386_s25  }
  0x23   :  { %s387_s10 = smov [#allocation8]   ;;  %s333_s14 = scalar_lea.hbm %s475_s2, 16 }
  0x24   :  { %s41_s11 = sshll.u32 %s387_s10, 4  ;;  %p334_p2 = scmp.ne.s32.totalorder %s475_s2, %s333_s14  ;;  %s42_s11 = int_to_ptr.vmem [resolvable:$true] %s41_s11 }
  0x25   :  { %p337_p3 = scmp.lt.u32.totalorder %s333_s14, %s475_s2 }
  0x27   :  { %p339_p4 = pnand %p337_p3, %p334_p2 }
  0x29   :  { %342 = shalt.err (!%p339_p4)
}
  0x2a   :  { %s343_s20 = scalar_lea.vmem %s42_s11, 16  ;;  %s347_s0 = scalar_lea.vmem %s42_s11, 32 }
  0x2b   :  { %p344_p5 = scmp.ne.s32.totalorder %s42_s11, %s343_s20  ;;  %p348_p6 = scmp.lt.s32.totalorder %s42_s11, %s42_s11 }
  0x2c   :  { %p349_p7 = scmp.lt.s32.totalorder %s347_s0, %s343_s20 }
  0x2e   :  { %p350_p8 = por %p349_p7, %p348_p6 }
  0x30   :  { %p351_p9 = pnand %p350_p8, %p344_p5 }
  0x32   :  { %354 = shalt.err (!%p351_p9)
}
  0x33   :  { %44 = dma.hbm_to_vmem [thread:$0]  %s475_s2, 16, %s42_s11, [#allocation7]  }
  0x34   :  { %377 = dma.done.wait [#allocation4], 256  }
  0x35   :  { %378 = vsyncadd [#allocation4], 4294967040 }
  0x36   :  { %379 = dma.done.wait [#allocation7], 2064  }
  0x37   :  { %380 = vsyncadd [#allocation7], 4294965232  ;;  %v56_v0 = vld [vmem:[#allocation6] sm:$0xff]  ;;  %v57_v1 = vld [vmem:[#allocation6 + $0x8] sm:$0xff]  ;;  %s388_s2 = smov [#allocation9]  }
  0x38   :  { %v58_v2 = vld [vmem:[#allocation6 + $0x10] sm:$0xff]  ;;  %v251_v3 = vpack.c.bf16 %v57_v1, %v56_v0  ;;  %v59_v4 = vld [vmem:[#allocation6 + $0x18] sm:$0xff]  ;;  %v60_v6 = vld [vmem:[#allocation6 + $0x20] sm:$0xff]  ;;  %s184_s22 = sshll.u32 %s388_s2, 4  ;;  %s185_s22 = int_to_ptr.vmem [resolvable:$true] %s184_s22 }
  0x39   :  { %v255_v5 = vpack.c.bf16 %v59_v4, %v58_v2  ;;  %v61_v7 = vld [vmem:[#allocation6 + $0x28] sm:$0xff]  ;;  %v54_v9 = vld [vmem:[#allocation3] sm:$0xff]  ;;  %v63_v11 = vld [vmem:[#allocation6 + $0x38] sm:$0xff]  ;;  %s355_s23 = scalar_lea.vmem %s185_s22, 256  ;;  %p360_p11 = scmp.lt.s32.totalorder %s185_s22, %s185_s22 }
  0x3a   :  { %252 = vmatprep.subr.bf16.mxu0 %v251_v3  ;;  %v259_v8 = vpack.c.bf16 %v61_v7, %v60_v6  ;;  %v62_v10 = vld [vmem:[#allocation6 + $0x30] sm:$0xff]  ;;  %248 = vmatprep.mubr.f32.mxu0 %v54_v9  ;;  %v64_v13 = vld [vmem:[#allocation6 + $0x40] sm:$0xff]  ;;  %v65_v14 = vld [vmem:[#allocation6 + $0x48] sm:$0xff]  ;;  %p356_p10 = scmp.ne.s32.totalorder %s185_s22, %s355_s23  ;;  %p361_p12 = scmp.lt.s32.totalorder %s355_s23, %s355_s23 }
  0x3b   :  { %254 = vmatpush3.bf16.msra.mxu0 %v251_v3  ;;  %v263_v12 = vpack.c.bf16 %v63_v11, %v62_v10  ;;  %v267_v15 = vpack.c.bf16 %v65_v14, %v64_v13  ;;  %v66_v16 = vld [vmem:[#allocation6 + $0x50] sm:$0xff]  ;;  %v67_v17 = vld [vmem:[#allocation6 + $0x58] sm:$0xff]  ;;  %v68_v19 = vld [vmem:[#allocation6 + $0x60] sm:$0xff] }
  0x3c   :  { %256 = vmatprep.subr.bf16.mxu0 %v255_v5  ;;  %v271_v18 = vpack.c.bf16 %v67_v17, %v66_v16  ;;  %v69_v20 = vld [vmem:[#allocation6 + $0x68] sm:$0xff]  ;;  %v70_v22 = vld [vmem:[#allocation6 + $0x70] sm:$0xff]  ;;  %v71_v23 = vld [vmem:[#allocation6 + $0x78] sm:$0xff]  ;;  %p362_p13 = por %p361_p12, %p360_p11 }
  0x3d   :  { %v275_v21 = vpack.c.bf16 %v69_v20, %v68_v19  ;;  %v279_v24 = vpack.c.bf16 %v71_v23, %v70_v22  ;;  %v55_v25 = vld [vmem:[#allocation3 + $0x8] sm:$0xff]  ;;  %v197_v26 = vld [vmem:[#allocation8] ss:$0 sm:$0xff] }
  0x3e   :  { %p363_p0 = pnand %p362_p13, %p356_p10 }
  0x3f   :  { %258 = vmatpush3.bf16.msra.mxu0 %v255_v5 }
  0x40   :  { %260 = vmatprep.subr.bf16.mxu0 %v259_v8 }
  0x43   :  { %262 = vmatpush3.bf16.msra.mxu0 %v259_v8 }
  0x44   :  { %264 = vmatprep.subr.bf16.mxu0 %v263_v12 }
  0x47   :  { %266 = vmatpush3.bf16.msra.mxu0 %v263_v12 }
  0x48   :  { %268 = vmatprep.subr.bf16.mxu0 %v267_v15 }
  0x4b   :  { %270 = vmatpush3.bf16.msra.mxu0 %v267_v15 }
  0x4c   :  { %272 = vmatprep.subr.bf16.mxu0 %v271_v18 }
  0x4f   :  { %274 = vmatpush3.bf16.msra.mxu0 %v271_v18 }
  0x50   :  { %276 = vmatprep.subr.bf16.mxu0 %v275_v21 }
  0x53   :  { %278 = vmatpush3.bf16.msra.mxu0 %v275_v21 }
  0x54   :  { %280 = vmatprep.subr.bf16.mxu0 %v279_v24 }
  0x57   :  { %282 = vmatpush3.bf16.msra.mxu0 %v279_v24 }
  0x5a   :  { %249 = vmatmul.mubr.f32.vlgmr.msra.gmra.mrb[0].mxu0 %v55_v25 }
 0x12d   :  { %v250_v27 = vpop.f32.mrb[0].mxu0 }
 0x12e   :  { %v176_v28 = vadd.f32 %v250_v27, %v197_v26  ;;  %v138_v29 = vpop.f32.mrb[1].mxu0 }
 0x12f   :  { %v175_v30 = vadd.f32 %v197_v26, %v138_v29 }
 0x130   :  { %178 = vst [vmem:[#allocation9 + $0x8] sm:$0xff] %v176_v28 }
 0x131   :  { %177 = vst [vmem:[#allocation9] sm:$0xff] %v175_v30 }
 0x132   :  { %366 = shalt.err (!%p363_p0)
}
 0x133   :  { %s367_s28 = scalar_lea.hbm %s476_s3, 256 }
 0x134   :  { %p368_p1 = scmp.ne.s32.totalorder %s476_s3, %s367_s28  ;;  %p371_p2 = scmp.lt.u32.totalorder %s367_s28, %s476_s3 }
 0x136   :  { %p373_p3 = pnand %p371_p2, %p368_p1 }
 0x138   :  { %376 = shalt.err (!%p373_p3)
}
 0x139   :  { %190 = dma.vmem_to_hbm [thread:$0]  %s185_s22, 256, %s476_s3, [#allocation5], %s385_s24, %s385_s24, %s386_s25  }
 0x13a   :  { %381 = dma.done.wait [#allocation5], 256  }
 0x13b   :  { %382 = vsyncadd [#allocation5], 4294967040 }
 0x13c   :  { %194 = vsyncpa [#allocation4], 1 }
 0x13d   :  { %195 = vsyncpa [#allocation7], 1 }
 0x13e   :  { %196 = vsyncpa [#allocation5], 1 }

</bundles_post_ra>
